<compile_context>
chip_gen: v6e
topology: v6e:2x2x1
jax: 0.10.0
libtpu: 0.0.40
codegen_flags: <defaults>
</compile_context>

<pallas_src>
import numpy as np
import jax
import jax.numpy as jnp
from jax import lax
from jax.experimental import pallas as pl
from jax.experimental.pallas import tpu as pltpu


# ----------------------------------------------------------------------------
# One-time feature probe: which rotation convention does pltpu.roll use?
# ----------------------------------------------------------------------------
_ROLL_MODE = None  # "fwd" (== jnp.roll), "rev" (opposite), or "none" (fallback)


def _detect_roll_mode():
    global _ROLL_MODE
    if _ROLL_MODE is not None:
        return _ROLL_MODE
    x = jnp.arange(8 * 128, dtype=jnp.float32).reshape(8, 128)

    def probe(x_ref, o_ref):
        o_ref[...] = pltpu.roll(x_ref[...], 1, axis=1)

    try:
        y = pl.pallas_call(
            probe, out_shape=jax.ShapeDtypeStruct((8, 128), jnp.float32))(x)
        if bool(jnp.array_equal(y, jnp.roll(x, 1, axis=1))):
            _ROLL_MODE = "fwd"
        elif bool(jnp.array_equal(y, jnp.roll(x, -1, axis=1))):
            _ROLL_MODE = "rev"
        else:
            _ROLL_MODE = "none"
    except Exception:
        _ROLL_MODE = "none"
    return _ROLL_MODE


# ----------------------------------------------------------------------------
# Kernel
# ----------------------------------------------------------------------------
def _make_kernel(K, dilation, L, C_in, F, has_conv3, fuse3, roll_mode):
    stack1 = (C_in % 8 == 0)          # f32 sublane tile = 8 rows
    stack2 = (F % 8 == 0)
    shifts = [(K - 1 - k) * dilation for k in range(K)]

    def kernel(x_ref, w1_ref, b1_ref, w2_ref, bo_ref, *rest):
        if has_conv3 and not fuse3:
            w3_ref, o_ref = rest
        else:
            (o_ref,) = rest

        x = x_ref[...].astype(jnp.float32)                  # (C_in, W), W = G*L
        W = x.shape[-1]
        # within-sample time position of every lane (batch folded into lanes)
        lane_t = lax.broadcasted_iota(jnp.int32, (1, W), 1) % L

        def shifted(a, s):
            """Causal right shift by s inside every length-L batch segment."""
            if s == 0:
                return a
            if s >= L:
                return jnp.zeros_like(a)
            if roll_mode == "fwd":
                r = pltpu.roll(a, s, axis=1)                 # XLU lane rotate
            elif roll_mode == "rev":
                r = pltpu.roll(a, a.shape[-1] - s, axis=1)
            else:                                            # safe fallback
                r = jnp.concatenate(
                    [jnp.zeros(a.shape[:-1] + (s,), a.dtype), a[:, :-s]],
                    axis=-1)
            # mask the first s lanes of every segment -> no cross-sample leak
            return jnp.where(lane_t < s, 0.0, r)

        def mix(w, a):
            """(O, C) x (C, W): MXU when C is sublane aligned, else VPU bcast."""
            c = a.shape[0]
            if c % 8 == 0:
                return jnp.dot(w, a, preferred_element_type=jnp.float32)
            out = w[:, 0:1] * a[0:1, :]
            for i in range(1, c):
                out = out + w[:, i:i + 1] * a[i:i + 1, :]
            return out

        # ---- conv1: causal dilated Conv1d(C_in -> F) as one stacked matmul --
        if stack1:
            xs = jnp.concatenate([shifted(x, s) for s in shifts], axis=0)
            h = jnp.dot(w1_ref[...], xs, preferred_element_type=jnp.float32)
        else:
            # tiny / unaligned C_in: mix channels first, then shift the (F, W)
            # tap output (the shift commutes with the channel mix).
            w1 = w1_ref[...]
            h = shifted(mix(w1[:, :C_in], x), shifts[0])
            for k in range(1, K):
                h = h + shifted(mix(w1[:, k * C_in:(k + 1) * C_in], x),
                                shifts[k])
        h = jnp.maximum(h + b1_ref[...], 0.0)                # bias + ReLU
        # NOTE: dropout is identity in eval mode, and the second F.relu in the
        # PyTorch forward acts on this already-ReLU'd tensor -> no-op, omitted.

        # ---- conv2: causal dilated Conv1d(F -> C_out) (+ fused 1x1 conv3) ---
        if stack2:
            parts = [shifted(h, s) for s in shifts]
            if fuse3:
                parts.append(x)                              # conv3 fused in
            hs = jnp.concatenate(parts, axis=0)              # (K*F[+C_in], W)
            y = jnp.dot(w2_ref[...], hs, preferred_element_type=jnp.float32)
        else:
            w2 = w2_ref[...]
            y = shifted(mix(w2[:, :F], h), shifts[0])
            for k in range(1, K):
                y = y + shifted(mix(w2[:, k * F:(k + 1) * F], h), shifts[k])
        y = y + bo_ref[...]                                  # b2 (+ b3) folded

        # ---- residual path ----
        if has_conv3:
            if not fuse3:
                y = y + mix(w3_ref[...], x)                  # separate 1x1 conv
        else:
            y = y + x                                        # identity residual
        o_ref[...] = y.astype(o_ref.dtype)

    return kernel


# ----------------------------------------------------------------------------
# Wrapper
# ----------------------------------------------------------------------------
def _choose_batch_group(B, L):
    """Samples per grid step.  Prefer the widest lane-dense block; only split
    into >=2 'parallel' steps (for v7x's two TensorCores) if every step keeps a
    128-aligned width of at least 1024 lanes."""
    for g in range(B - 1, 0, -1):
        if B % g == 0 and (g * L) % 128 == 0 and g * L >= 1024:
            return g
    return B


def residual_block_pallas(x, params, *, kernel_size, dilation, apply_relu2,
                          has_conv3):
    """darts _ResidualBlock forward (eval mode).  x: (B, C_in, L) -> (B, C_out, L)."""
    del apply_relu2  # second ReLU is a no-op in eval mode (see kernel note)
    B, C_in, L = map(int, x.shape)
    w1, b1, w2, b2 = params["w1"], params["b1"], params["w2"], params["b2"]
    F_ = int(w1.shape[0])
    C_out = int(w2.shape[0])
    K = int(kernel_size)

    fuse3 = bool(has_conv3 and F_ % 8 == 0 and C_in % 8 == 0)

    # Fold batch into the lane (time) axis: (B, C, L) -> (C, B*L).
    x_flat = jnp.transpose(x, (1, 0, 2)).reshape(C_in, B * L).astype(jnp.float32)

    # Stack the K taps along the contraction dim: w_s[:, k*C + i] = w[:, i, k].
    w1_s = jnp.transpose(w1, (0, 2, 1)).reshape(F_, K * C_in).astype(jnp.float32)
    w2_s = jnp.transpose(w2, (0, 2, 1)).reshape(C_out, K * F_).astype(jnp.float32)
    b1_c = b1.reshape(F_, 1).astype(jnp.float32)
    b_out = b2.astype(jnp.float32)
    if has_conv3:
        b_out = b_out + params["b3"].astype(jnp.float32)     # fold conv3 bias
    b_out = b_out.reshape(C_out, 1)

    w2_full = w2_s
    if fuse3:                                                # fuse 1x1 conv3
        w2_full = jnp.concatenate(
            [w2_s, params["w3"][:, :, 0].astype(jnp.float32)], axis=1)
    C2 = int(w2_full.shape[1])

    G = _choose_batch_group(B, L)
    Wlane = G * L
    steps = B // G

    inputs = [x_flat, w1_s, b1_c, w2_full, b_out]
    in_specs = [
        pl.BlockSpec((C_in, Wlane), lambda g: (0, g)),
        pl.BlockSpec((F_, K * C_in), lambda g: (0, 0)),
        pl.BlockSpec((F_, 1), lambda g: (0, 0)),
        pl.BlockSpec((C_out, C2), lambda g: (0, 0)),
        pl.BlockSpec((C_out, 1), lambda g: (0, 0)),
    ]
    if has_conv3 and not fuse3:
        inputs.append(params["w3"][:, :, 0].astype(jnp.float32))
        in_specs.append(pl.BlockSpec((C_out, C_in), lambda g: (0, 0)))

    kernel = _make_kernel(K, int(dilation), L, C_in, F_, bool(has_conv3),
                          fuse3, _detect_roll_mode())

    flops = 2 * B * L * (K * C_in * F_ + C2 * C_out)
    if has_conv3 and not fuse3:
        flops += 2 * B * L * C_in * C_out
    bytes_accessed = 4 * (C_in * B * L + C_out * B * L
                          + F_ * K * C_in + C_out * C2 + F_ + C_out)

    out_flat = pl.pallas_call(
        kernel,
        out_shape=jax.ShapeDtypeStruct((C_out, B * L), jnp.float32),
        grid=(steps,),
        in_specs=in_specs,
        out_specs=pl.BlockSpec((C_out, Wlane), lambda g: (0, g)),
        compiler_params=pltpu.CompilerParams(dimension_semantics=("parallel",)),
        cost_estimate=pl.CostEstimate(flops=flops, transcendentals=0,
                                      bytes_accessed=bytes_accessed),
    )(*inputs)
    # TODO(synk): for very long L (VMEM-limited, esp. v7x's 64 MiB), tile the
    # time axis with a (K-1)*dilation left halo instead of one full-L block.

    # Unfold: (C_out, B*L) -> (B, C_out, L).
    return jnp.transpose(out_flat.reshape(C_out, B, L), (1, 0, 2))


# ----------------------------------------------------------------------------
# Pure-JAX reference (matches the PyTorch forward in eval mode)
# ----------------------------------------------------------------------------
def residual_block_ref(x, params, *, kernel_size, dilation, apply_relu2,
                       has_conv3):
    left_pad = dilation * (kernel_size - 1)
    dn = ("NCH", "OIH", "NCH")

    def causal_conv(inp, w, b):
        out = lax.conv_general_dilated(
            inp, w, window_strides=(1,), padding=[(left_pad, 0)],
            rhs_dilation=(dilation,), dimension_numbers=dn)
        return out + b[None, :, None]

    residual = x
    h = jax.nn.relu(causal_conv(x, params["w1"], params["b1"]))
    if apply_relu2:
        h = jax.nn.relu(h)
    y = causal_conv(h, params["w2"], params["b2"])
    if has_conv3:
        residual = lax.conv_general_dilated(
            x, params["w3"], window_strides=(1,), padding=[(0, 0)],
            dimension_numbers=dn) + params["b3"][None, :, None]
    return y + residual


if __name__ == "__main__":
    key = jax.random.PRNGKey(0)
    B, L = 2, 128
    num_filters, kernel_size, dilation_base, num_layers = 8, 3, 2, 3

    def uni(k, shape, fan_in):
        bound = 1.0 / np.sqrt(fan_in)
        return jax.random.uniform(k, shape, jnp.float32, -bound, bound)

    # all three block flavours: first (C_in=1, conv3), middle (identity
    # residual), last (C_out=1, conv3, no second relu).
    for nr_blocks_below in (0, 1, 2):
        C_in = 1 if nr_blocks_below == 0 else num_filters
        C_out = 1 if nr_blocks_below == num_layers - 1 else num_filters
        dilation = dilation_base ** nr_blocks_below
        apply_relu2 = nr_blocks_below < num_layers - 1
        has_conv3 = nr_blocks_below in (0, num_layers - 1)

        key, kx, k1, kb1, k2, kb2, k3, kb3 = jax.random.split(key, 8)
        x = jax.random.normal(kx, (B, C_in, L), jnp.float32)

        params = dict(
            w1=uni(k1, (num_filters, C_in, kernel_size), C_in * kernel_size),
            b1=uni(kb1, (num_filters,), C_in * kernel_size),
            w2=uni(k2, (C_out, num_filters, kernel_size),
                   num_filters * kernel_size),
            b2=uni(kb2, (C_out,), num_filters * kernel_size),
        )
        if has_conv3:
            params["w3"] = uni(k3, (C_out, C_in, 1), C_in)
            params["b3"] = uni(kb3, (C_out,), C_in)

        out = residual_block_pallas(
            x, params, kernel_size=kernel_size, dilation=dilation,
            apply_relu2=apply_relu2, has_conv3=has_conv3)
        out = jax.block_until_ready(out)

        ref = residual_block_ref(
            x, params, kernel_size=kernel_size, dilation=dilation,
            apply_relu2=apply_relu2, has_conv3=has_conv3)
        np.testing.assert_allclose(np.asarray(out), np.asarray(ref),
                                   rtol=1e-5, atol=1e-5)

    print("KERNEL_OK")
</pallas_src>

<mosaic_0001>
module attributes {stable_mosaic.version = 11 : i64} {
  func.func @probe(%arg0: memref<8x128xf32, #tpu.memory_space<vmem>>, %arg1: memref<8x128xf32, #tpu.memory_space<vmem>>) attributes {dimension_semantics = [], scalar_prefetch = 0 : i64, scratch_operands = 0 : i64, tpu.core_type = #tpu.core_type<tc>} {
    %c0 = arith.constant 0 : index
    %c0_0 = arith.constant 0 : index
    %0 = vector.load %arg0[%c0, %c0_0] : memref<8x128xf32, #tpu.memory_space<vmem>>, vector<8x128xf32>
    %c1_i32 = arith.constant 1 : i32
    %1 = tpu.dynamic_rotate %0 by %c1_i32 dim 1 : vector<8x128xf32>, i32 -> vector<8x128xf32>
    %c0_1 = arith.constant 0 : index
    %c0_2 = arith.constant 0 : index
    %2 = vector.load %arg1[%c0_1, %c0_2] : memref<8x128xf32, #tpu.memory_space<vmem>>, vector<8x128xf32>
    tpu.vector_store %arg1[%c0_1, %c0_2], %1 {strides = array<i32>} : memref<8x128xf32, #tpu.memory_space<vmem>>, vector<8x128xf32>,
    return
  }
}

module attributes {stable_mosaic.version = 11 : i64} {
  func.func @kernel(%arg0: i32, %arg1: memref<1x256xf32, #tpu.memory_space<vmem>>, %arg2: memref<8x3xf32, #tpu.memory_space<vmem>>, %arg3: memref<8x1xf32, #tpu.memory_space<vmem>>, %arg4: memref<8x24xf32, #tpu.memory_space<vmem>>, %arg5: memref<8x1xf32, #tpu.memory_space<vmem>>, %arg6: memref<8x1xf32, #tpu.memory_space<vmem>>, %arg7: memref<8x256xf32, #tpu.memory_space<vmem>>) attributes {dimension_semantics = [#tpu.dimension_semantics<parallel>], iteration_bounds = array<i64: 1>, scalar_prefetch = 0 : i64, scratch_operands = 0 : i64, tpu.core_type = #tpu.core_type<tc>, window_params = [{transform_indices = @transform_0, window_bounds = array<i64: 1, 256>}, {pipeline_mode = #tpu.pipeline_mode<synchronous>, transform_indices = @transform_1, window_bounds = array<i64: 8, 3>}, {pipeline_mode = #tpu.pipeline_mode<synchronous>, transform_indices = @transform_2, window_bounds = array<i64: 8, 1>}, {pipeline_mode = #tpu.pipeline_mode<synchronous>, transform_indices = @transform_3, window_bounds = array<i64: 8, 24>}, {pipeline_mode = #tpu.pipeline_mode<synchronous>, transform_indices = @transform_4, window_bounds = array<i64: 8, 1>}, {pipeline_mode = #tpu.pipeline_mode<synchronous>, transform_indices = @transform_5, window_bounds = array<i64: 8, 1>}, {transform_indices = @transform_6, window_bounds = array<i64: 8, 256>}]} {
    %c0 = arith.constant 0 : index
    %c0_0 = arith.constant 0 : index
    %0 = vector.load %arg1[%c0, %c0_0] : memref<1x256xf32, #tpu.memory_space<vmem>>, vector<1x256xf32>
    %1 = tpu.iota {dimensions = array<i32: 1>} : vector<1x256xi32>
    %c128_i32 = arith.constant 128 : i32
    %c0_i32 = arith.constant 0 : i32
    %2 = arith.cmpi eq, %c128_i32, %c0_i32 : i32
    %c1_i32 = arith.constant 1 : i32
    %3 = arith.select %2, %c1_i32, %c128_i32 : i32
    %4 = vector.broadcast %3 : i32 to vector<1x256xi32>
    %5 = arith.remsi %1, %4 : vector<1x256xi32>
    %c0_i32_1 = arith.constant 0 : i32
    %6 = vector.broadcast %c0_i32_1 : i32 to vector<1x256xi32>
    %7 = arith.cmpi ne, %5, %6 : vector<1x256xi32>
    %c0_i32_2 = arith.constant 0 : i32
    %8 = vector.broadcast %c0_i32_2 : i32 to vector<1x256xi32>
    %9 = arith.cmpi slt, %5, %8 : vector<1x256xi32>
    %c0_i32_3 = arith.constant 0 : i32
    %10 = arith.cmpi slt, %3, %c0_i32_3 : i32
    %11 = vector.broadcast %10 : i1 to vector<1x256xi1>
    %12 = vector.broadcast %11 : vector<1x256xi1> to vector<1x256xi1>
    %13 = arith.xori %9, %12 : vector<1x256xi1>
    %14 = arith.andi %13, %7 : vector<1x256xi1>
    %15 = vector.broadcast %3 : i32 to vector<1x256xi32>
    %16 = arith.addi %5, %15 : vector<1x256xi32>
    %17 = arith.select %14, %16, %5 : vector<1x256xi1>, vector<1x256xi32>
    %c0_4 = arith.constant 0 : index
    %c0_5 = arith.constant 0 : index
    %18 = vector.load %arg2[%c0_4, %c0_5] : memref<8x3xf32, #tpu.memory_space<vmem>>, vector<8x3xf32>
    %19 = vector.extract_strided_slice %18 {offsets = [0, 0], sizes = [8, 1], strides = [1, 1]} : vector<8x3xf32> to vector<8x1xf32>
    %20 = vector.broadcast %19 : vector<8x1xf32> to vector<8x256xf32>
    %21 = vector.broadcast %0 : vector<1x256xf32> to vector<8x256xf32>
    %22 = arith.mulf %20, %21 : vector<8x256xf32>
    %cst = arith.constant 0.000000e+00 : f32
    %23 = vector.broadcast %cst : f32 to vector<8x2xf32>
    %24 = vector.extract_strided_slice %22 {offsets = [0, 0], sizes = [8, 254], strides = [1, 1]} : vector<8x256xf32> to vector<8x254xf32>
    %25 = tpu.concatenate %23, %24 in 1 : vector<8x2xf32>, vector<8x254xf32> -> vector<8x256xf32>
    %c2_i32 = arith.constant 2 : i32
    %26 = vector.broadcast %c2_i32 : i32 to vector<1x256xi32>
    %27 = arith.cmpi slt, %17, %26 : vector<1x256xi32>
    %cst_6 = arith.constant 0.000000e+00 : f32
    %28 = vector.shape_cast %27 : vector<1x256xi1> to vector<1x256xi1>
    %29 = vector.broadcast %28 : vector<1x256xi1> to vector<8x256xi1>
    %30 = vector.broadcast %cst_6 : f32 to vector<8x256xf32>
    %31 = arith.select %29, %30, %25 : vector<8x256xi1>, vector<8x256xf32>
    %32 = vector.extract_strided_slice %18 {offsets = [0, 1], sizes = [8, 1], strides = [1, 1]} : vector<8x3xf32> to vector<8x1xf32>
    %33 = vector.broadcast %32 : vector<8x1xf32> to vector<8x256xf32>
    %34 = vector.broadcast %0 : vector<1x256xf32> to vector<8x256xf32>
    %35 = arith.mulf %33, %34 : vector<8x256xf32>
    %cst_7 = arith.constant 0.000000e+00 : f32
    %36 = vector.broadcast %cst_7 : f32 to vector<8x1xf32>
    %37 = vector.extract_strided_slice %35 {offsets = [0, 0], sizes = [8, 255], strides = [1, 1]} : vector<8x256xf32> to vector<8x255xf32>
    %38 = tpu.concatenate %36, %37 in 1 : vector<8x1xf32>, vector<8x255xf32> -> vector<8x256xf32>
    %c1_i32_8 = arith.constant 1 : i32
    %39 = vector.broadcast %c1_i32_8 : i32 to vector<1x256xi32>
    %40 = arith.cmpi slt, %17, %39 : vector<1x256xi32>
    %cst_9 = arith.constant 0.000000e+00 : f32
    %41 = vector.shape_cast %40 : vector<1x256xi1> to vector<1x256xi1>
    %42 = vector.broadcast %41 : vector<1x256xi1> to vector<8x256xi1>
    %43 = vector.broadcast %cst_9 : f32 to vector<8x256xf32>
    %44 = arith.select %42, %43, %38 : vector<8x256xi1>, vector<8x256xf32>
    %45 = arith.addf %31, %44 : vector<8x256xf32>
    %46 = vector.extract_strided_slice %18 {offsets = [0, 2], sizes = [8, 1], strides = [1, 1]} : vector<8x3xf32> to vector<8x1xf32>
    %47 = vector.broadcast %46 : vector<8x1xf32> to vector<8x256xf32>
    %48 = vector.broadcast %0 : vector<1x256xf32> to vector<8x256xf32>
    %49 = arith.mulf %47, %48 : vector<8x256xf32>
    %50 = arith.addf %45, %49 : vector<8x256xf32>
    %c0_10 = arith.constant 0 : index
    %c0_11 = arith.constant 0 : index
    %51 = vector.load %arg3[%c0_10, %c0_11] : memref<8x1xf32, #tpu.memory_space<vmem>>, vector<8x1xf32>
    %52 = vector.broadcast %51 : vector<8x1xf32> to vector<8x256xf32>
    %53 = arith.addf %50, %52 : vector<8x256xf32>
    %cst_12 = arith.constant 0.000000e+00 : f32
    %54 = vector.broadcast %cst_12 : f32 to vector<8x256xf32>
    %55 = arith.maximumf %53, %54 : vector<8x256xf32>
    %cst_13 = arith.constant 0.000000e+00 : f32
    %56 = vector.broadcast %cst_13 : f32 to vector<8x2xf32>
    %57 = vector.extract_strided_slice %55 {offsets = [0, 0], sizes = [8, 254], strides = [1, 1]} : vector<8x256xf32> to vector<8x254xf32>
    %58 = tpu.concatenate %56, %57 in 1 : vector<8x2xf32>, vector<8x254xf32> -> vector<8x256xf32>
    %c2_i32_14 = arith.constant 2 : i32
    %59 = vector.broadcast %c2_i32_14 : i32 to vector<1x256xi32>
    %60 = arith.cmpi slt, %17, %59 : vector<1x256xi32>
    %cst_15 = arith.constant 0.000000e+00 : f32
    %61 = vector.shape_cast %60 : vector<1x256xi1> to vector<1x256xi1>
    %62 = vector.broadcast %61 : vector<1x256xi1> to vector<8x256xi1>
    %63 = vector.broadcast %cst_15 : f32 to vector<8x256xf32>
    %64 = arith.select %62, %63, %58 : vector<8x256xi1>, vector<8x256xf32>
    %cst_16 = arith.constant 0.000000e+00 : f32
    %65 = vector.broadcast %cst_16 : f32 to vector<8x1xf32>
    %66 = vector.extract_strided_slice %55 {offsets = [0, 0], sizes = [8, 255], strides = [1, 1]} : vector<8x256xf32> to vector<8x255xf32>
    %67 = tpu.concatenate %65, %66 in 1 : vector<8x1xf32>, vector<8x255xf32> -> vector<8x256xf32>
    %c1_i32_17 = arith.constant 1 : i32
    %68 = vector.broadcast %c1_i32_17 : i32 to vector<1x256xi32>
    %69 = arith.cmpi slt, %17, %68 : vector<1x256xi32>
    %cst_18 = arith.constant 0.000000e+00 : f32
    %70 = vector.shape_cast %69 : vector<1x256xi1> to vector<1x256xi1>
    %71 = vector.broadcast %70 : vector<1x256xi1> to vector<8x256xi1>
    %72 = vector.broadcast %cst_18 : f32 to vector<8x256xf32>
    %73 = arith.select %71, %72, %67 : vector<8x256xi1>, vector<8x256xf32>
    %74 = tpu.concatenate %64, %73, %55 in 0 : vector<8x256xf32>, vector<8x256xf32>, vector<8x256xf32> -> vector<24x256xf32>
    %c0_19 = arith.constant 0 : index
    %c0_20 = arith.constant 0 : index
    %75 = vector.load %arg4[%c0_19, %c0_20] : memref<8x24xf32, #tpu.memory_space<vmem>>, vector<8x24xf32>
    %cst_21 = arith.constant dense<0.000000e+00> : vector<8x256xf32>
    %76 = tpu.matmul %75, %74, %cst_21 {dimension_numbers = #tpu.dot_dimension_numbers<[1], [0], [0], [1], [0, 0, 1, 1], [], []>} : vector<8x24xf32>, vector<24x256xf32>, vector<8x256xf32> -> vector<8x256xf32>
    %c0_22 = arith.constant 0 : index
    %c0_23 = arith.constant 0 : index
    %77 = vector.load %arg5[%c0_22, %c0_23] : memref<8x1xf32, #tpu.memory_space<vmem>>, vector<8x1xf32>
    %78 = vector.broadcast %77 : vector<8x1xf32> to vector<8x256xf32>
    %79 = arith.addf %76, %78 : vector<8x256xf32>
    %c0_24 = arith.constant 0 : index
    %c0_25 = arith.constant 0 : index
    %80 = vector.load %arg6[%c0_24, %c0_25] : memref<8x1xf32, #tpu.memory_space<vmem>>, vector<8x1xf32>
    %81 = vector.broadcast %80 : vector<8x1xf32> to vector<8x256xf32>
    %82 = vector.broadcast %0 : vector<1x256xf32> to vector<8x256xf32>
    %83 = arith.mulf %81, %82 : vector<8x256xf32>
    %84 = arith.addf %79, %83 : vector<8x256xf32>
    %c0_26 = arith.constant 0 : index
    %c0_27 = arith.constant 0 : index
    %85 = vector.load %arg7[%c0_26, %c0_27] : memref<8x256xf32, #tpu.memory_space<vmem>>, vector<8x256xf32>
    tpu.vector_store %arg7[%c0_26, %c0_27], %84 {strides = array<i32>} : memref<8x256xf32, #tpu.memory_space<vmem>>, vector<8x256xf32>,
    return
  }
  func.func @transform_0(%arg0: i32) -> (i32, i32) {
    %c0_i32 = arith.constant 0 : i32
    %c0_i32_0 = arith.constant 0 : i32
    return %c0_i32, %arg0 : i32, i32
  }
  func.func @transform_1(%arg0: i32) -> (i32, i32) {
    %c0_i32 = arith.constant 0 : i32
    %c0_i32_0 = arith.constant 0 : i32
    %c0_i32_1 = arith.constant 0 : i32
    return %c0_i32, %c0_i32_0 : i32, i32
  }
  func.func @transform_2(%arg0: i32) -> (i32, i32) {
    %c0_i32 = arith.constant 0 : i32
    %c0_i32_0 = arith.constant 0 : i32
    %c0_i32_1 = arith.constant 0 : i32
    return %c0_i32, %c0_i32_0 : i32, i32
  }
  func.func @transform_3(%arg0: i32) -> (i32, i32) {
    %c0_i32 = arith.constant 0 : i32
    %c0_i32_0 = arith.constant 0 : i32
    %c0_i32_1 = arith.constant 0 : i32
    return %c0_i32, %c0_i32_0 : i32, i32
  }
  func.func @transform_4(%arg0: i32) -> (i32, i32) {
    %c0_i32 = arith.constant 0 : i32
    %c0_i32_0 = arith.constant 0 : i32
    %c0_i32_1 = arith.constant 0 : i32
    return %c0_i32, %c0_i32_0 : i32, i32
  }
  func.func @transform_5(%arg0: i32) -> (i32, i32) {
    %c0_i32 = arith.constant 0 : i32
    %c0_i32_0 = arith.constant 0 : i32
    %c0_i32_1 = arith.constant 0 : i32
    return %c0_i32, %c0_i32_0 : i32, i32
  }
  func.func @transform_6(%arg0: i32) -> (i32, i32) {
    %c0_i32 = arith.constant 0 : i32
    %c0_i32_0 = arith.constant 0 : i32
    return %c0_i32, %arg0 : i32, i32
  }
}

</mosaic_0001>

<bundles_post_ra>
// kernel: tpu_custom_call.1
= control target key start
LH: loop header
LB: loop body
LE: loop exit
PB: predicated region body
PF: predicated region fallthrough
CT: control target
= control target key end

     0   :  { %6 = vsyncpa [#allocation3], 0  ;;  %s106_s0 = inlined_call_operand.hbm [shape: f32[8,128], index: 0, kind: input, shape index: {}]   ;;  %s107_s1 = inlined_call_operand.hbm [shape: f32[8,128], index: 1, kind: output, shape index: {}]  }
   0x1   :  { %7 = vsyncpa [#allocation4], 0  ;;  %s87_s6 = smov [#allocation2]  }
   0x2   :  { %s14_s7 = sshll.u32 %s87_s6, 4  ;;  %s15_s7 = int_to_ptr.vmem [resolvable:$true] %s14_s7 }
   0x3   :  { %s51_s8 = scalar_lea.vmem %s15_s7, 128  ;;  %p56_p1 = scmp.lt.s32.totalorder %s15_s7, %s15_s7 }
   0x4   :  { %p52_p0 = scmp.ne.s32.totalorder %s15_s7, %s51_s8  ;;  %p57_p2 = scmp.lt.s32.totalorder %s51_s8, %s51_s8 }
   0x6   :  { %p58_p3 = por %p57_p2, %p56_p1 }
   0x8   :  { %p59_p4 = pnand %p58_p3, %p52_p0 }
   0xa   :  { %62 = shalt.err (!%p59_p4)
}
   0xb   :  { %17 = dma.hbm_to_vmem [thread:$0]  %s106_s0, 128, %s15_s7, [#allocation3]  }
   0xc   :  { %83 = dma.done.wait [#allocation3], 128  }
   0xd   :  { %84 = vsyncadd [#allocation3], 4294967168  ;;  %v21_v0 = vld [vmem:[#allocation2] sm:$0xff]  ;;  %s88_s11 = smov 1   ;;  %s89_s12 = smov [#allocation5]  }
   0xe   :  { %22 = vrot.lane.b32.xlu0 %v21_v0, %s88_s11  ;;  %s31_s13 = sshll.u32 %s89_s12, 4  ;;  %s32_s13 = int_to_ptr.vmem [resolvable:$true] %s31_s13 }
   0xf   :  { %s63_s14 = scalar_lea.vmem %s32_s13, 128  ;;  %p68_p6 = scmp.lt.s32.totalorder %s32_s13, %s32_s13 }
  0x10   :  { %p64_p5 = scmp.ne.s32.totalorder %s32_s13, %s63_s14  ;;  %p69_p7 = scmp.lt.s32.totalorder %s63_s14, %s63_s14 }
  0x12   :  { %p70_p8 = por %p69_p7, %p68_p6 }
  0x14   :  { %p71_p9 = pnand %p70_p8, %p64_p5 }
  0x80   :  { %v23_v1 = vpop.permute.xlu0 %22 }
  0x81   :  { %24 = vst [vmem:[#allocation5] sm:$0xff] %v23_v1 }
  0x82   :  { %74 = shalt.err (!%p71_p9)
}
  0x83   :  { %34 = dma.vmem_to_hbm [thread:$0]  %s32_s13, 128, %s107_s1, [#allocation4]  }
  0x84   :  { %85 = dma.done.wait [#allocation4], 128  }
  0x85   :  { %86 = vsyncadd [#allocation4], 4294967168 }
  0x86   :  { %38 = vsyncpa [#allocation3], 1 }
  0x87   :  { %39 = vsyncpa [#allocation4], 1 }

// kernel: tpu_custom_call.1
= control target key start
LH: loop header
LB: loop body
LE: loop exit
PB: predicated region body
PF: predicated region fallthrough
CT: control target
= control target key end

     0   :  { %v308_v1 = vmov 0   ;;  %v309_v2 = vmov 2   ;;  %s419_s0 = inlined_call_operand.vmem [shape: f32[1,256], index: 0, kind: input, shape index: {}]   ;;  %s420_s1 = inlined_call_operand.vmem [shape: f32[8,3], index: 1, kind: input, shape index: {}]   ;;  %s421_s2 = inlined_call_operand.vmem [shape: f32[8,1], index: 2, kind: input, shape index: {}]   ;;  %s422_s3 = inlined_call_operand.vmem [shape: f32[8,24], index: 3, kind: input, shape index: {}]   ;;  %s423_s4 = inlined_call_operand.vmem [shape: f32[8,1], index: 4, kind: input, shape index: {}]   ;;  %s424_s5 = inlined_call_operand.vmem [shape: f32[8,1], index: 5, kind: input, shape index: {}]   ;;  %s425_s6 = inlined_call_operand.hbm [shape: f32[8,256], index: 6, kind: output, shape index: {}]  }
   0x1   :  { %v52_v0 = vld [vmem:[%s420_s1] sm:$0xff]  ;;  %281 = vset.pattern.permute.xlu0 %v308_v1  ;;  %283 = vset.pattern.permute.xlu1 %v309_v2 }
   0x2   :  { %11 = vsyncpa [#allocation3], 0  ;;  %55 = vperm.xlu0 %281, %v52_v0   ;;  %118 = vperm.xlu1 %283, %v52_v0   ;;  %v310_v3 = vmov 1   ;;  %v25_v4 = vlaneseq  ;;  %v24_v7 = vld [vmem:[%s419_s0] sm:$0x3]  ;;  %s311_s1 = smov 2  }
   0x3   :  { %s312_s25 = smov 1   ;;  %v125_v17 = vld [vmem:[%s421_s2] sm:$0xff]  ;;  %vm102_vm0 = vcmask 7168   ;;  %vm77_vm1 = vcmask 15360   ;;  %v313_v47 = vmov 0.0   ;;  %vm164_vm10 = vcmask 195584  }
   0x4   :  { %v60_v5 = vshrl.u32 %v25_v4, 7  ;;  %v26_v19 = vand.u32 127, %v25_v4  ;;  %232 = vmatprep.mubr.f32.mxu0 %v313_v47  ;;  %v158_v48 = vld [vmem:[%s423_s4] sm:$0xff]  ;;  %s314_s30 = smov [#allocation2]  }
   0x5   :  { %v239_v49 = vld [vmem:[%s424_s5] sm:$0xff]  ;;  %s257_s7 = sshll.u32 %s314_s30, 4  ;;  %s258_s7 = int_to_ptr.vmem [resolvable:$true] %s257_s7 }
   0x6   :  { %282 = vset.pattern.permute.xlu0 %v310_v3  ;;  %285 = vset.pattern.permute.xlu1 %v308_v1  ;;  %v61_v6 = vsub.s32 0, %v60_v5  ;;  %v65_v9 = vsub.s32 1, %v60_v5  ;;  %v27_v21 = vadd.s32 128, %v26_v19  ;;  %vm107_vm2 = vcmp.lt.s32.totalorder %v26_v19, 1  ;;  %v157_v57 = vld [vmem:[%s422_s3] sm:$0xff]  ;;  %s286_s3 = scalar_lea.vmem %s258_s7, 256  ;;  %p291_p1 = scmp.lt.s32.totalorder %s258_s7, %s258_s7 }
   0x7   :  { %91 = vperm.xlu0 %282, %v52_v0   ;;  %vm82_vm4 = vcmp.lt.s32.totalorder %v26_v19, 2  ;;  %vm267_vm7 = vmneg %vm107_vm2  ;;  %p287_p0 = scmp.ne.s32.totalorder %s258_s7, %s286_s3  ;;  %p292_p2 = scmp.lt.s32.totalorder %s286_s3, %s286_s3 }
   0x8   :  { %v356_v8 = vrot.slane %v24_v7, %v61_v6  ;;  %v358_v11 = vrot.slane %v24_v7, %v65_v9  ;;  %v39_v23 = vand.u32 127, %v27_v21  ;;  %vm271_vm9 = vmneg %vm82_vm4 }
   0x9   :  { %p293_p3 = por %p292_p2, %p291_p1 }
   0xa   :  { %vm372_vm3 = vcmp.lt.s32.totalorder %v39_v23, 1  ;;  %vm377_vm5 = vcmp.lt.s32.totalorder %v39_v23, 2 }
   0xb   :  { %284 = vset.pattern.permute.xlu0 %v308_v1  ;;  %vm265_vm6 = vmneg %vm372_vm3  ;;  %p294_p4 = pnand %p293_p3, %p287_p0 }
   0xc   :  { %vm269_vm8 = vmneg %vm377_vm5 }
  0x7d   :  { %v56_v10 = vpop.permute.xlu0 %55  ;;  %v119_v18 = vpop.permute.xlu1 %118 }
  0x7e   :  { %v69_v12 = vmul.f32 %v356_v8, %v56_v10  ;;  %v70_v13 = vmul.f32 %v358_v11, %v56_v10  ;;  %v121_v38 = vmul.f32 %v119_v18, %v356_v8  ;;  %v122_v39 = vmul.f32 %v119_v18, %v358_v11 }
  0x80   :  { %73 = vrot.lane.b32.xlu1 %v69_v12, %s311_s1 }
  0x82   :  { %v92_v14 = vpop.permute.xlu0 %91 }
  0x83   :  { %v94_v15 = vmul.f32 %v92_v14, %v356_v8  ;;  %v95_v16 = vmul.f32 %v92_v14, %v358_v11 }
  0x84   :  { %75 = vrot.lane.b32.xlu1 %v70_v13, %s311_s1 }
  0x85   :  { %98 = vrot.lane.b32.xlu0 %v94_v15, %s312_s25 }
  0x88   :  { %100 = vrot.lane.b32.xlu1 %v95_v16, %s312_s25 }
  0x89   :  { %128 = vperm.xlu0 %284, %v125_v17  }
  0xf2   :  { %v74_v20 = vpop.permute.xlu1 %73 }
  0xf3   :  { %v81_v28 = vsel %vm77_vm1, 0.0, %v74_v20 }
  0xf4   :  { %v88_v34 = vsel %vm82_vm4, 0.0, %v81_v28 }
  0xf6   :  { %v76_v22 = vpop.permute.xlu1 %75 }
  0xf7   :  { %v99_v24 = vpop.permute.xlu0 %98  ;;  %v78_v30 = vsel %vm77_vm1, %v74_v20, %v76_v22 }
  0xf8   :  { %v106_v25 = vsel %vm102_vm0, 0.0, %v99_v24  ;;  %v89_v35 = vsel %vm377_vm5, 0.0, %v78_v30 }
  0xf9   :  { %v113_v32 = vsel %vm107_vm2, 0.0, %v106_v25 }
  0xfa   :  { %v101_v27 = vpop.permute.xlu1 %100  ;;  %v115_v36 = vadd.f32 %v113_v32, %v88_v34 }
  0xfb   :  { %v103_v31 = vsel %vm102_vm0, %v99_v24, %v101_v27 }
  0xfc   :  { %v114_v33 = vsel %vm372_vm3, 0.0, %v103_v31  ;;  %v123_v40 = vadd.f32 %v121_v38, %v115_v36 }
  0xfd   :  { %v116_v37 = vadd.f32 %v114_v33, %v89_v35 }
  0xff   :  { %v124_v41 = vadd.f32 %v122_v39, %v116_v37 }
 0x104   :  { %v129_v42 = vpop.permute.xlu0 %128 }
 0x105   :  { %v131_v43 = vadd.f32 %v129_v42, %v123_v40  ;;  %v132_v44 = vadd.f32 %v129_v42, %v124_v41 }
 0x107   :  { %v133_v45 = vmax.f32 %v131_v43, 0.0  ;;  %v134_v46 = vmax.f32 %v132_v44, 0.0 }
 0x109   :  { %137 = vrot.lane.b32.xlu0 %v133_v45, %s311_s1  ;;  %147 = vrot.lane.b32.xlu1 %v133_v45, %s312_s25 }
 0x10a   :  { %194 = vmatprep.subr.mxu0 %v134_v46 }
 0x10b   :  { %195 = vmatpush1.msra.mxu0 %v133_v45 }
 0x10d   :  { %161 = vperm.xlu0 %284, %v158_v48   ;;  %149 = vrot.lane.b32.xlu1 %v134_v46, %s312_s25 }
 0x111   :  { %139 = vrot.lane.b32.xlu1 %v134_v46, %s311_s1 }
 0x115   :  { %242 = vperm.xlu1 %285, %v239_v49  }
 0x17b   :  { %v148_v50 = vpop.permute.xlu1 %147  ;;  %v138_v54 = vpop.permute.xlu0 %137 }
 0x17c   :  { %v154_v53 = vsel %vm102_vm0, 0.0, %v148_v50  ;;  %v144_v58 = vsel %vm77_vm1, 0.0, %v138_v54 }
 0x17f   :  { %v150_v51 = vpop.permute.xlu1 %149 }
 0x180   :  { %v151_v52 = vsel %vm102_vm0, %v148_v50, %v150_v51 }
 0x181   :  { %266 = vmatprep.subr.msk.mxu0 %vm265_vm6, %v151_v52 }
 0x182   :  { %268 = vmatpush1.msk.msra.mxu0 %vm267_vm7, %v154_v53 }
 0x183   :  { %v140_v55 = vpop.permute.xlu1 %139 }
 0x184   :  { %v141_v56 = vsel %vm77_vm1, %v138_v54, %v140_v55 }
 0x185   :  { %270 = vmatprep.subr.msk.mxu0 %vm269_vm8, %v141_v56 }
 0x186   :  { %272 = vmatpush1.msk.msra.mxu0 %vm271_vm9, %v144_v58 }
 0x187   :  { %273 = vmatmul.mubr.msk.f32.vlgmr.msra.gmra.mxu0 %vm164_vm10, %v157_v57 }
 0x188   :  { %v162_v61 = vpop.permute.xlu0 %161 }
 0x190   :  { %v243_v59 = vpop.permute.xlu1 %242 }
 0x191   :  { %v245_v60 = vmul.f32 %v243_v59, %v356_v8  ;;  %v246_v0 = vmul.f32 %v243_v59, %v358_v11 }
 0x247   :  { %v234_v62 = vpop.f32.mrf.mxu0 }
 0x248   :  { %v235_v63 = vadd.f32 %v234_v62, %v162_v61 }
 0x249   :  { %v236_v1 = vpop.f32.mrf.mxu0 }
 0x24a   :  { %v247_v2 = vadd.f32 %v245_v60, %v235_v63  ;;  %v237_v3 = vadd.f32 %v236_v1, %v162_v61 }
 0x24c   :  { %249 = vst [vmem:[#allocation2] sm:$0xff] %v247_v2  ;;  %v248_v4 = vadd.f32 %v246_v0, %v237_v3 }
 0x24e   :  { %250 = vst [vmem:[#allocation2 + $0x8] sm:$0xff] %v248_v4 }
 0x24f   :  { %297 = shalt.err (!%p294_p4)
}
 0x250   :  { %260 = dma.vmem_to_hbm [thread:$0]  %s258_s7, 256, %s425_s6, [#allocation3]  }
 0x251   :  { %306 = dma.done.wait [#allocation3], 256  }
 0x252   :  { %307 = vsyncadd [#allocation3], 4294967040 }
 0x253   :  { %264 = vsyncpa [#allocation3], 1 }

</bundles_post_ra>
